<compile_context>
chip_gen: v6e
topology: v6e:2x2x1
jax: 0.10.0
libtpu: 0.0.40
codegen_flags: <defaults>
</compile_context>

<pallas_src>
import jax
import jax.numpy as jnp
from jax.experimental import pallas as pl
from jax.experimental.pallas import tpu as pltpu


def _gim_kernel(net_idx_ref,      # SMEM prefetch: (B,) int32 (consumed by index_maps)
                nets_ref,         # (1, N, N)   f32 : gathered nets[net_index[b]]
                x_ref,            # (1, N, Fin) f32
                w1_ref,           # (Fin, H)    f32
                b1_ref,           # (1, H)      f32
                wp_ref,           # (H, PACK)   f32 : [I_H | W2 | 0]
                bp_ref,           # (1, PACK)   f32 : [0   | b2 | 0]
                adj_out_ref,      # (1, N, N)   f32 : adj_matrix pass-through
                packed_ref):      # (1, 1, PACK) f32 : [emb | logits | 0]
    del net_idx_ref  # only used by the BlockSpec index_maps

    # Fused gather: this VMEM block *is* nets[net_index[b]] (selected by index_map).
    adj = nets_ref[0]                                      # (N, N) f32
    adj_out_ref[...] = nets_ref[...]                       # exact f32 pass-through

    # GCN layer: h = relu((adj @ x) @ W1 + b1)
    # bf16 operands on the MXU, f32 accumulation, f32 epilogue (no bf16 VPU work).
    x_bf = x_ref[0].astype(jnp.bfloat16)                   # (N, Fin)
    ax = jnp.dot(adj.astype(jnp.bfloat16), x_bf,
                 preferred_element_type=jnp.float32)       # (N, Fin) f32
    h = jnp.dot(ax.astype(jnp.bfloat16),
                w1_ref[...].astype(jnp.bfloat16),
                preferred_element_type=jnp.float32)        # (N, H) f32
    h = jnp.maximum(h + b1_ref[...], 0.0)

    # Graph readout: mean over nodes as sum * (1/N) (static constant, no divide).
    inv_n = 1.0 / h.shape[0]
    emb = jnp.sum(h, axis=0, keepdims=True) * inv_n        # (1, H) f32

    # Packed lane-dense head: one f32 matmul produces [emb | emb @ W2 + b2 | 0]
    # so the per-graph output is a single 128-wide store (no narrow masked stores).
    packed_ref[0] = (jnp.dot(emb, wp_ref[...],
                             preferred_element_type=jnp.float32)
                     + bp_ref[...])


@jax.jit
def gim_forward(x, nets, net_index, w1, b1, w2, b2):
    """GIM forward (net_type='ind', structure_learning=False).

    Returns (output, embeddings, adj_matrix), matching the PyTorch module.
    """
    B, N, F_in = x.shape
    H = w1.shape[1]
    C = w2.shape[1]
    PACK = max(128, pl.cdiv(H + C, 128) * 128)

    # Fold the classification head and an identity "copy embeddings through"
    # into one lane-dense (H, PACK) matmul: packed = emb @ [I | W2 | 0] + [0 | b2 | 0].
    w_pack = jnp.zeros((H, PACK), jnp.float32)
    w_pack = w_pack.at[:, :H].set(jnp.eye(H, dtype=jnp.float32))
    w_pack = w_pack.at[:, H:H + C].set(w2)
    b_pack = jnp.zeros((1, PACK), jnp.float32).at[:, H:H + C].set(b2)

    b1_2d = b1.reshape(1, H)
    net_index = net_index.astype(jnp.int32)

    # Per-step VMEM footprint (Pallas double-buffers the pipelined blocks);
    # keep the scoped limit well under v7x's 64 MiB physical VMEM.
    block_bytes = 4 * (2 * N * N + N * F_in + F_in * H + H
                       + H * PACK + PACK + PACK + N * H)
    vmem_limit = int(min(max(8 * block_bytes, 4 << 20), 48 << 20))

    flops = 2 * B * (N * N * F_in + N * F_in * H + H * PACK)
    bytes_accessed = 4 * (2 * B * N * N + B * N * F_in + B * PACK
                          + F_in * H + H + H * PACK + PACK)

    grid_spec = pltpu.PrefetchScalarGridSpec(
        num_scalar_prefetch=1,                 # net_index -> SMEM
        grid=(B,),                             # one graph per grid step
        in_specs=[
            # Gather fused into the pipeline: block b is nets[net_index[b]].
            pl.BlockSpec((1, N, N), lambda b, idx: (idx[b], 0, 0)),
            pl.BlockSpec((1, N, F_in), lambda b, idx: (b, 0, 0)),
            # Small weights: full-array blocks, constant index (VMEM residents).
            pl.BlockSpec((F_in, H), lambda b, idx: (0, 0)),
            pl.BlockSpec((1, H), lambda b, idx: (0, 0)),
            pl.BlockSpec((H, PACK), lambda b, idx: (0, 0)),
            pl.BlockSpec((1, PACK), lambda b, idx: (0, 0)),
        ],
        out_specs=(
            pl.BlockSpec((1, N, N), lambda b, idx: (b, 0, 0)),
            pl.BlockSpec((1, 1, PACK), lambda b, idx: (b, 0, 0)),
        ),
    )

    adj_matrix, packed = pl.pallas_call(
        _gim_kernel,
        out_shape=(
            jax.ShapeDtypeStruct((B, N, N), jnp.float32),      # adj_matrix
            jax.ShapeDtypeStruct((B, 1, PACK), jnp.float32),   # [emb | logits | 0]
        ),
        grid_spec=grid_spec,
        compiler_params=pltpu.CompilerParams(
            dimension_semantics=("parallel",),   # batch is embarrassingly parallel
            vmem_limit_bytes=vmem_limit),
        cost_estimate=pl.CostEstimate(
            flops=flops, transcendentals=0, bytes_accessed=bytes_accessed),
    )(net_index, nets, x, w1, b1_2d, w_pack, b_pack)

    embeddings = packed[:, 0, :H]
    output = packed[:, 0, H:H + C]
    return output, embeddings, adj_matrix


if __name__ == "__main__":
    # Small deterministic configuration consistent with the module.
    B = 2            # batch
    N = 16           # num_nodes
    F_IN = 8         # node feature dim
    OUT_FEATS = 32   # gnn output dim / linear input
    NUM_CLS = 4
    NUM_INDS = 5     # number of individual networks (net_type='ind')

    key = jax.random.PRNGKey(0)
    k_x, k_w1, k_b1, k_w2, k_b2 = jax.random.split(key, 5)

    # Inputs.
    x = jax.random.normal(k_x, (B, N, F_IN), dtype=jnp.float32)
    net_index = jnp.array([0, 3], dtype=jnp.int32)               # (B,)

    # Parameters (deterministic in-script init).
    nets = jnp.ones((NUM_INDS, N, N), dtype=jnp.float32)         # nn.Parameter(ones)
    w1 = jax.random.normal(k_w1, (F_IN, OUT_FEATS), dtype=jnp.float32) * 0.1
    b1 = jax.random.normal(k_b1, (OUT_FEATS,), dtype=jnp.float32) * 0.01
    w2 = jax.random.normal(k_w2, (OUT_FEATS, NUM_CLS), dtype=jnp.float32) * 0.1
    b2 = jax.random.normal(k_b2, (NUM_CLS,), dtype=jnp.float32) * 0.01

    output, embeddings, adj_matrix = gim_forward(
        x, nets, net_index, w1, b1, w2, b2)
    jax.block_until_ready((output, embeddings, adj_matrix))

    assert output.shape == (B, NUM_CLS)
    assert embeddings.shape == (B, OUT_FEATS)
    assert adj_matrix.shape == (B, N, N)

    # Sanity check against a pure-JAX f32 reference (loose tol for bf16 matmuls).
    adj_ref = nets[net_index]
    h_ref = jnp.maximum(
        jnp.einsum('bij,bjf->bif', adj_ref, x) @ w1 + b1, 0.0)
    emb_ref = h_ref.mean(axis=1)
    out_ref = emb_ref @ w2 + b2
    assert bool(jnp.all(adj_matrix == adj_ref))
    assert float(jnp.max(jnp.abs(embeddings - emb_ref))) < 5e-2
    assert float(jnp.max(jnp.abs(output - out_ref))) < 5e-2

    print("KERNEL_OK")
</pallas_src>

<mosaic_0001>
module attributes {stable_mosaic.version = 11 : i64} {
  func.func @_gim_kernel(%arg0: i32, %arg1: memref<2xi32, #tpu.memory_space<smem>>, %arg2: memref<1x16x16xf32, #tpu.memory_space<vmem>>, %arg3: memref<1x16x8xf32, #tpu.memory_space<vmem>>, %arg4: memref<8x32xf32, #tpu.memory_space<vmem>>, %arg5: memref<1x32xf32, #tpu.memory_space<vmem>>, %arg6: memref<32x128xf32, #tpu.memory_space<vmem>>, %arg7: memref<1x128xf32, #tpu.memory_space<vmem>>, %arg8: memref<1x16x16xf32, #tpu.memory_space<vmem>>, %arg9: memref<1x1x128xf32, #tpu.memory_space<vmem>>) attributes {dimension_semantics = [#tpu.dimension_semantics<parallel>], iteration_bounds = array<i64: 2>, scalar_prefetch = 1 : i64, scratch_operands = 0 : i64, tpu.core_type = #tpu.core_type<tc>, window_params = [{transform_indices = @transform_0, window_bounds = array<i64: 1, 16, 16>}, {transform_indices = @transform_1, window_bounds = array<i64: 1, 16, 8>}, {pipeline_mode = #tpu.pipeline_mode<synchronous>, transform_indices = @transform_2, window_bounds = array<i64: 8, 32>}, {pipeline_mode = #tpu.pipeline_mode<synchronous>, transform_indices = @transform_3, window_bounds = array<i64: 1, 32>}, {pipeline_mode = #tpu.pipeline_mode<synchronous>, transform_indices = @transform_4, window_bounds = array<i64: 32, 128>}, {pipeline_mode = #tpu.pipeline_mode<synchronous>, transform_indices = @transform_5, window_bounds = array<i64: 1, 128>}, {transform_indices = @transform_6, window_bounds = array<i64: 1, 16, 16>}, {transform_indices = @transform_7, window_bounds = array<i64: 1, 1, 128>}]} {
    %c0 = arith.constant 0 : index
    %c0_0 = arith.constant 0 : index
    %c0_1 = arith.constant 0 : index
    %0 = vector.load %arg2[%c0, %c0_0, %c0_1] : memref<1x16x16xf32, #tpu.memory_space<vmem>>, vector<1x16x16xf32>
    %1 = vector.shape_cast %0 : vector<1x16x16xf32> to vector<16x16xf32>
    %c0_2 = arith.constant 0 : index
    %c0_3 = arith.constant 0 : index
    %c0_4 = arith.constant 0 : index
    %2 = vector.load %arg2[%c0_2, %c0_3, %c0_4] : memref<1x16x16xf32, #tpu.memory_space<vmem>>, vector<1x16x16xf32>
    %c0_5 = arith.constant 0 : index
    %c0_6 = arith.constant 0 : index
    %c0_7 = arith.constant 0 : index
    %3 = vector.load %arg8[%c0_5, %c0_6, %c0_7] : memref<1x16x16xf32, #tpu.memory_space<vmem>>, vector<1x16x16xf32>
    tpu.vector_store %arg8[%c0_5, %c0_6, %c0_7], %2 {strides = array<i32>} : memref<1x16x16xf32, #tpu.memory_space<vmem>>, vector<1x16x16xf32>,
    %c0_8 = arith.constant 0 : index
    %c0_9 = arith.constant 0 : index
    %c0_10 = arith.constant 0 : index
    %4 = vector.load %arg3[%c0_8, %c0_9, %c0_10] : memref<1x16x8xf32, #tpu.memory_space<vmem>>, vector<1x16x8xf32>
    %5 = vector.shape_cast %4 : vector<1x16x8xf32> to vector<16x8xf32>
    %6 = arith.truncf %5 : vector<16x8xf32> to vector<16x8xbf16>
    %7 = arith.truncf %1 : vector<16x16xf32> to vector<16x16xbf16>
    %cst = arith.constant dense<0.000000e+00> : vector<16x8xf32>
    %8 = tpu.matmul %7, %6, %cst {dimension_numbers = #tpu.dot_dimension_numbers<[1], [0], [0], [1], [0, 0, 1, 1], [], []>} : vector<16x16xbf16>, vector<16x8xbf16>, vector<16x8xf32> -> vector<16x8xf32>
    %9 = arith.truncf %8 : vector<16x8xf32> to vector<16x8xbf16>
    %c0_11 = arith.constant 0 : index
    %c0_12 = arith.constant 0 : index
    %10 = vector.load %arg4[%c0_11, %c0_12] : memref<8x32xf32, #tpu.memory_space<vmem>>, vector<8x32xf32>
    %11 = arith.truncf %10 : vector<8x32xf32> to vector<8x32xbf16>
    %cst_13 = arith.constant dense<0.000000e+00> : vector<16x32xf32>
    %12 = tpu.matmul %9, %11, %cst_13 {dimension_numbers = #tpu.dot_dimension_numbers<[1], [0], [0], [1], [0, 0, 1, 1], [], []>} : vector<16x8xbf16>, vector<8x32xbf16>, vector<16x32xf32> -> vector<16x32xf32>
    %c0_14 = arith.constant 0 : index
    %c0_15 = arith.constant 0 : index
    %13 = vector.load %arg5[%c0_14, %c0_15] : memref<1x32xf32, #tpu.memory_space<vmem>>, vector<1x32xf32>
    %14 = vector.broadcast %13 : vector<1x32xf32> to vector<16x32xf32>
    %15 = arith.addf %12, %14 : vector<16x32xf32>
    %cst_16 = arith.constant 0.000000e+00 : f32
    %16 = vector.broadcast %cst_16 : f32 to vector<16x32xf32>
    %17 = arith.maximumf %15, %16 : vector<16x32xf32>
    %cst_17 = arith.constant dense<0.000000e+00> : vector<32xf32>
    %18 = vector.multi_reduction <add>, %17, %cst_17 [0] : vector<16x32xf32> to vector<32xf32>
    %19 = vector.shape_cast %18 : vector<32xf32> to vector<1x32xf32>
    %cst_18 = arith.constant 6.250000e-02 : f32
    %20 = vector.broadcast %cst_18 : f32 to vector<1x32xf32>
    %21 = arith.mulf %19, %20 : vector<1x32xf32>
    %c0_19 = arith.constant 0 : index
    %c0_20 = arith.constant 0 : index
    %22 = vector.load %arg6[%c0_19, %c0_20] : memref<32x128xf32, #tpu.memory_space<vmem>>, vector<32x128xf32>
    %cst_21 = arith.constant dense<0.000000e+00> : vector<1x128xf32>
    %23 = tpu.matmul %21, %22, %cst_21 {dimension_numbers = #tpu.dot_dimension_numbers<[1], [0], [0], [1], [0, 0, 1, 1], [], []>} : vector<1x32xf32>, vector<32x128xf32>, vector<1x128xf32> -> vector<1x128xf32>
    %c0_22 = arith.constant 0 : index
    %c0_23 = arith.constant 0 : index
    %24 = vector.load %arg7[%c0_22, %c0_23] : memref<1x128xf32, #tpu.memory_space<vmem>>, vector<1x128xf32>
    %25 = arith.addf %23, %24 : vector<1x128xf32>
    %c0_24 = arith.constant 0 : index
    %c0_25 = arith.constant 0 : index
    %c0_26 = arith.constant 0 : index
    %26 = vector.load %arg9[%c0_24, %c0_25, %c0_26] : memref<1x1x128xf32, #tpu.memory_space<vmem>>, vector<1x1x128xf32>
    %27 = vector.shape_cast %26 : vector<1x1x128xf32> to vector<1x128xf32>
    %28 = vector.shape_cast %25 : vector<1x128xf32> to vector<1x1x128xf32>
    tpu.vector_store %arg9[%c0_24, %c0_25, %c0_26], %28 {strides = array<i32>} : memref<1x1x128xf32, #tpu.memory_space<vmem>>, vector<1x1x128xf32>,
    return
  }
  func.func @transform_0(%arg0: i32, %arg1: memref<2xi32, #tpu.memory_space<smem>>) -> (i32, i32, i32) {
    %0 = arith.index_cast %arg0 : i32 to index
    %1 = memref.load %arg1[%0] : memref<2xi32, #tpu.memory_space<smem>>
    %c0_i32 = arith.constant 0 : i32
    %c0_i32_0 = arith.constant 0 : i32
    %c0_i32_1 = arith.constant 0 : i32
    return %1, %c0_i32, %c0_i32_0 : i32, i32, i32
  }
  func.func @transform_1(%arg0: i32, %arg1: memref<2xi32, #tpu.memory_space<smem>>) -> (i32, i32, i32) {
    %c0_i32 = arith.constant 0 : i32
    %c0_i32_0 = arith.constant 0 : i32
    %c0_i32_1 = arith.constant 0 : i32
    return %arg0, %c0_i32, %c0_i32_0 : i32, i32, i32
  }
  func.func @transform_2(%arg0: i32, %arg1: memref<2xi32, #tpu.memory_space<smem>>) -> (i32, i32) {
    %c0_i32 = arith.constant 0 : i32
    %c0_i32_0 = arith.constant 0 : i32
    %c0_i32_1 = arith.constant 0 : i32
    return %c0_i32, %c0_i32_0 : i32, i32
  }
  func.func @transform_3(%arg0: i32, %arg1: memref<2xi32, #tpu.memory_space<smem>>) -> (i32, i32) {
    %c0_i32 = arith.constant 0 : i32
    %c0_i32_0 = arith.constant 0 : i32
    %c0_i32_1 = arith.constant 0 : i32
    return %c0_i32, %c0_i32_0 : i32, i32
  }
  func.func @transform_4(%arg0: i32, %arg1: memref<2xi32, #tpu.memory_space<smem>>) -> (i32, i32) {
    %c0_i32 = arith.constant 0 : i32
    %c0_i32_0 = arith.constant 0 : i32
    %c0_i32_1 = arith.constant 0 : i32
    return %c0_i32, %c0_i32_0 : i32, i32
  }
  func.func @transform_5(%arg0: i32, %arg1: memref<2xi32, #tpu.memory_space<smem>>) -> (i32, i32) {
    %c0_i32 = arith.constant 0 : i32
    %c0_i32_0 = arith.constant 0 : i32
    %c0_i32_1 = arith.constant 0 : i32
    return %c0_i32, %c0_i32_0 : i32, i32
  }
  func.func @transform_6(%arg0: i32, %arg1: memref<2xi32, #tpu.memory_space<smem>>) -> (i32, i32, i32) {
    %c0_i32 = arith.constant 0 : i32
    %c0_i32_0 = arith.constant 0 : i32
    %c0_i32_1 = arith.constant 0 : i32
    return %arg0, %c0_i32, %c0_i32_0 : i32, i32, i32
  }
  func.func @transform_7(%arg0: i32, %arg1: memref<2xi32, #tpu.memory_space<smem>>) -> (i32, i32, i32) {
    %c0_i32 = arith.constant 0 : i32
    %c0_i32_0 = arith.constant 0 : i32
    %c0_i32_1 = arith.constant 0 : i32
    return %arg0, %c0_i32, %c0_i32_0 : i32, i32, i32
  }
}

</mosaic_0001>

<bundles_post_ra>
// kernel: gim_forward.1
= control target key start
LH: loop header
LB: loop body
LE: loop exit
PB: predicated region body
PF: predicated region fallthrough
CT: control target
= control target key end

     0   :  { %s1011_s0 = inlined_call_operand.vmem [shape: s32[2], index: 0, kind: input, shape index: {}]   ;;  %s1012_s1 = inlined_call_operand.vmem [shape: f32[5,16,16], index: 1, kind: input, shape index: {}]   ;;  %s1013_s2 = inlined_call_operand.vmem [shape: f32[2,16,8], index: 2, kind: input, shape index: {}]   ;;  %s1014_s3 = inlined_call_operand.vmem [shape: f32[8,32], index: 3, kind: input, shape index: {}]   ;;  %s1015_s4 = inlined_call_operand.vmem [shape: f32[1,32], index: 4, kind: input, shape index: {}]   ;;  %s1016_s5 = inlined_call_operand.vmem [shape: f32[32,128], index: 5, kind: input, shape index: {}]   ;;  %s1017_s6 = inlined_call_operand.vmem [shape: f32[1,128], index: 6, kind: input, shape index: {}]   ;;  %s1018_s7 = inlined_call_operand.hbm [shape: f32[2,16,16], index: 7, kind: output, shape index: {0}]   ;;  %s1019_s8 = inlined_call_operand.vmem [shape: f32[2,1,128], index: 8, kind: output, shape index: {1}]  }
   0x1   :  { %s14_s29 = sshll.u32 %s1011_s0, 4  ;;  %s15_s29 = int_to_ptr.vmem [resolvable:$true] %s14_s29 }
   0x2   :  { %s735_s30 = scalar_lea.vmem %s15_s29, 16  ;;  %p740_p1 = scmp.lt.s32.totalorder %s15_s29, %s15_s29 }
   0x3   :  { %p736_p0 = scmp.ne.s32.totalorder %s15_s29, %s735_s30  ;;  %p741_p2 = scmp.lt.s32.totalorder %s735_s30, %s735_s30 }
   0x5   :  { %p742_p3 = por %p741_p2, %p740_p1 }
   0x7   :  { %p743_p4 = pnand %p742_p3, %p736_p0 }
   0x9   :  { %746 = shalt.err (!%p743_p4)  }
   0xa   :  { %s811_s9 = smov [#allocation3]  }
   0xb   :  { %17 = dma.vmem_to_smem %s15_s29, 16, %s811_s9, [#allocation2] }
   0xc   :  { %789 = dma.done.wait [#allocation2], 16 }
   0xd   :  { %790 = vsyncadd [#allocation2], 4294967280 }
   0xe   :  { %19 = sfence }
   0xf   :  { %20 = vsyncpa [#allocation5], 0 }
  0x10   :  { %22 = vsyncpa [#allocation5 + $0x1], 0  ;;  %s865_s10 = smov 0   ;;  %s867_s11 = smov 0  }
  0x11   :  { %s869_s0 = smov 0   ;;  %s871_s12 = smov 0  }
  0x12 LB: > { %s886_s13 = sadd.s32 4294967295, %s809_s12   ;;  %s638_s14 = sadd.s32 4294967294, %s809_s12   ;;  %s809_s12 = sphi %s871_s12, %s1025_s12   ;;  %s805_s0 = sphi %s869_s0, %s1024_s0   ;;  %s801_s11 = sphi %s867_s11, %s1023_s11   ;;  %s797_s10 = sphi %s865_s10, %s1022_s10  }
  0x13   : > { %s890_s15 = sadd.s32 1, %s809_s12   ;;  %s173_s16 = sadd.s32 1, %s805_s0 }
  0x14   : > { %s170_s17 = ssub.s32 %s809_s12, %s890_s15  ;;  %p183_p5 = scmp.ne.s32.totalorder %s805_s0, %s801_s11 }
  0x15   : > { %p171_p6 = scmp.eq.s32.totalorder %s170_s17, 0  ;;  %p184_p7 = scmp.eq.s32.totalorder %s886_s13, 1 }
  0x16   : > { %p189_p8 = scmp.ne.s32.totalorder %s801_s11, %s797_s10  ;;  %p190_p9 = scmp.eq.s32.totalorder %s638_s14, 1 }
  0x17   : > { %s901_s18 = scalar_select %p171_p6, %s805_s0, %s173_s16  }
  0x18   : > { %p903_p10 = por %p184_p7, %p183_p5  ;;  %p907_p11 = por %p190_p9, %p189_p8 }
  0x19   : > { %p641_p12 = scmp.ge.s32.totalorder %s809_s12, 1  ;;  %p264_p13 = scmp.lt.s32.totalorder %s809_s12, 3 }
  0x1b   : > { %p265_p0 = pnand %p641_p12, %p264_p13 }
  0x1c   : > { %p312_p1 = scmp.lt.s32.totalorder (!%p265_p0), %s886_s13, 1  ;;  %s305_s21 = sld [smem:[#allocation3 + %s886_s13]] (!%p265_p0) }
  0x1d   : > { %268 = sbr.rel (%p265_p0) target bundleno = 657 (0x291), region = 44  ;;  %s297_s27 = sand.u32 (!%p265_p0), 1, %s801_s11  }
  0x1e   : > { %s642_s28 = sshll.u32 (!%p265_p0), %s297_s27, 4 }
  0x1f   : > { %s930_s16 = scalar_lea.vmem (!%p265_p0), [#allocation4], %s642_s28  ;;  %s964_s28 = scalar_lea.sflag (!%p265_p0), [#allocation5], %s297_s27 }
  0x22   : > { %v812_v0 = vmov 0.0   ;;  %vm813_vm0 = vmmov 0   ;;  %s917_s22 = scalar_select %p312_p1, %s886_s13, 1  ;;  %vm323_vm1 = vcmask 130048   ;;  %v375_v7 = vld [vmem:[%s1014_s3] sm:$0xff]  ;;  %vm388_vm2 = vcmask 1043456  }
  0x23   : > { %668 = vmatprep.subr.bf16.mxu0 %v812_v0  ;;  %670 = vmatprep.mubr.msk.bf16.mxu0 %vm813_vm0, %v812_v0  ;;  %p306_p2 = scmp.lt.s32.totalorder %s305_s21, 4  ;;  %v376_v8 = vpack.c.bf16 %v375_v7, %v375_v7  ;;  %vm384_vm3 = vcmask 64512   ;;  %v449_v15 = vld [vmem:[%s1016_s5 + $0x18] sm:$0xff]  ;;  %v448_v16 = vld [vmem:[%s1016_s5 + $0x10] sm:$0xff]  ;;  %v447_v17 = vld [vmem:[%s1016_s5 + $0x8] sm:$0xff]  ;;  %vm435_vm4 = vcmask 261120  }
  0x24   : > { %674 = vmatprep.subr.bf16.mxu1 %v812_v0  ;;  %676 = vmatprep.mubr.msk.bf16.mxu1 %vm813_vm0, %v812_v0  ;;  %s657_s23 = sshll.u32 %s917_s22, 4  ;;  %v446_v18 = vld [vmem:[%s1016_s5] sm:$0xff] }
  0x25   : > { %s316_s26 = scalar_lea.vmem %s1013_s2, %s657_s23  ;;  %s1027_s21 = smov (!%p306_p2, %s305_s21), 4  ;;  %v390_v9 = vsel %vm388_vm2, %v376_v8, 0  ;;  %v648_v19 = vld [vmem:[%s1015_s4] ss:$0 sm:$0xff] }
  0x26   : > { %v326_v1 = vld [vmem:[%s316_s26] sm:$0xff]  ;;  %v327_v2 = vld [vmem:[%s316_s26 + $0x8] sm:$0xff]  ;;  %s656_s29 = sshll.u32 %s1027_s21, 4  ;;  %675 = vmatpush3.bf16.msra.mxu1 %v390_v9  ;;  %s542_s23 = sshll.u32 %s930_s16, 4  ;;  %s954_s23 = int_to_ptr.vmem [resolvable:$true] %s542_s23 }
  0x27   : > { %v328_v3 = vpack.c.bf16 %v327_v2, %v326_v1  ;;  %s310_s14 = scalar_lea.vmem %s1012_s1, %s656_s29  ;;  %s658_s21 = sshll.u32 %s886_s13, 8 }
  0x28   : > { %v321_v4 = vld [vmem:[%s310_s14] sm:$0xff]  ;;  %v322_v5 = vld [vmem:[%s310_s14 + $0x8] sm:$0xff]  ;;  %s960_s26 = scalar_lea.hbm %s1018_s7, %s658_s21  ;;  %s747_s29 = scalar_lea.vmem %s954_s23, 256 }
  0x29   : > { %669 = vmatpush3.bf16.msra.mxu0 %v328_v3  ;;  %324 = vst.msk [vmem:[%s930_s16] sm:$0xff] %vm323_vm1, %v321_v4  ;;  %325 = vst.msk [vmem:[%s930_s16 + $0x8] sm:$0xff] %vm323_vm1, %v322_v5  ;;  %v329_v6 = vpack.c.bf16 %v322_v5, %v321_v4  ;;  %p748_p3 = scmp.ne.s32.totalorder %s954_s23, %s747_s29  ;;  %s814_s16 = smov [#allocation4]  }
  0x2a   : > { %680 = vmatprep.subr.mxu0 %v812_v0  ;;  %s751_s30 = sshll.u32 %s814_s16, 4  ;;  %s752_s30 = int_to_ptr.vmem [resolvable:$false] %s751_s30 }
  0x2b   : > { %p749_p4 = pnand %p748_p3, %p903_p10  ;;  %s753_s9 = scalar_lea.vmem %s752_s30, 512 }
  0x2c   : > { %671 = vmatmul.mubr.msk.bf16.vlgmr.msra.gmra.mxu0 %vm323_vm1, %v329_v6  ;;  %p754_p6 = scmp.lt.s32.totalorder %s954_s23, %s752_s30  ;;  %p755_p7 = scmp.lt.s32.totalorder %s753_s9, %s747_s29 }
  0x2d   : > { %688 = vmatprep.mubr.msk.f32.mxu0 %vm813_vm0, %v812_v0  ;;  %681 = vmatpush3.msra.mxu0 %v449_v15  ;;  %p750_p5 = pneg %p749_p4 }
  0x2e   : > { %682 = vmatprep.subr.mxu0 %v812_v0  ;;  %p756_p8 = por %p755_p7, %p754_p6 }
  0x2f   : > { %683 = vmatpush3.msra.mxu0 %v448_v16 }
  0x30   : > { %684 = vmatprep.subr.mxu0 %v812_v0  ;;  %p757_p9 = pnand %p756_p8, %p750_p5 }
  0x31   : > { %685 = vmatpush3.msra.mxu0 %v447_v17 }
  0x32   : > { %686 = vmatprep.subr.mxu0 %v812_v0 }
  0x33   : > { %687 = vmatpush3.msra.mxu0 %v446_v18 }
  0xec   : > { %v367_v10 = vpop.f32.mrf.mxu0 }
  0xee   : > { %v672_v11 = vpop.f32.mrf.mxu0 }
  0xf0   : > { %v370_v12 = vpop.f32.mrf.mxu0 }
  0xf1   : > { %v374_v13 = vpack.c.bf16 %v370_v12, %v367_v10 }
  0xf2   : > { %v673_v14 = vpop.f32.mrf.mxu0 }
  0xf3   : > { %677 = vmatmul.mubr.msk.bf16.vlgmr.msra.gmra.mxu1 %vm384_vm3, %v374_v13 }
 0x1b3   : > { %v426_v20 = vpop.f32.mrf.mxu1 }
 0x1b4   : > { %v427_v21 = vadd.f32 %v648_v19, %v426_v20 }
 0x1b5   : > { %v678_v22 = vpop.f32.mrf.mxu1 }
 0x1b6   : > { %v433_v24 = vmax.f32 %v427_v21, 0.0 }
 0x1b7   : > { %v429_v23 = vpop.f32.mrf.mxu1 }
 0x1b8   : > { %v430_v25 = vadd.f32 %v648_v19, %v429_v23  ;;  %v436_v28 = vsel %vm435_vm4, %v433_v24, 0.0 }
 0x1b9   : > { %v679_v26 = vpop.f32.mrf.mxu1 }
 0x1ba   : > { %v434_v27 = vmax.f32 %v430_v25, 0.0 }
 0x1bc   : > { %v437_v29 = vsel %vm435_vm4, %v434_v27, 0.0 }
 0x1bd   : > { %v438_v30 = vadd.f32 %v437_v29, %v436_v28 }
 0x1bf   : > { %v439_v31 = vrot.slane %v438_v30, 4 }
 0x1c1   : > { %v440_v32 = vadd.f32 %v439_v31, %v438_v30 }
 0x1c3   : > { %v441_v33 = vrot.slane %v440_v32, 2 }
 0x1c5   : > { %v442_v34 = vadd.f32 %v441_v33, %v440_v32 }
 0x1c7   : > { %v443_v35 = vrot.slane %v442_v34, 1 }
 0x1c9   : > { %v444_v36 = vadd.f32 %v443_v35, %v442_v34 }
 0x1cb   : > { %v445_v37 = vmul.f32 0.0625, %v444_v36 }
 0x1cd   : > { %689 = vmatmul.mubr.msk.f32.vlgmr.msra.gmra.mxu0 %vm435_vm4, %v445_v37 }
 0x1ce   : > { %760 = shalt.err (!%p757_p9)
}
 0x1cf   : > { %s761_s13 = scalar_lea.hbm %s960_s26, 256  ;;  %s765_s17 = scalar_lea.hbm %s1018_s7, 512 }
 0x1d0   : > { %p762_p12 = scmp.ne.s32.totalorder %s960_s26, %s761_s13  ;;  %p766_p1 = scmp.lt.s32.totalorder %s960_s26, %s1018_s7 }
 0x1d1   : > { %p767_p2 = scmp.lt.s32.totalorder %s765_s17, %s761_s13 }
 0x1d2   : > { %p763_p13 = pnand %p762_p12, %p903_p10 }
 0x1d3   : > { %p768_p3 = por %p767_p2, %p766_p1 }
 0x1d4   : > { %p764_p0 = pneg %p763_p13 }
 0x1d6   : > { %p769_p4 = pnand %p768_p3, %p764_p0 }
 0x1d8   : > { %772 = shalt.err (!%p769_p4)
}
 0x1d9   : > { %s815_s25 = smov 128   ;;  %s816_s29 = smov 8   ;;  %v450_v38 = vld [vmem:[%s1017_s6] sm:$0x1] }
 0x1da   : > { %691 = dma.vmem_to_hbm [thread:$0]  (%p903_p10), %s954_s23, 256, %s960_s26, %s964_s28, %s815_s25, %s815_s25, %s816_s29  }
 0x1db   : > { %s319_s13 = scalar_lea.vmem %s1019_s8, %s917_s22 }
 0x28d   : > { %v520_v39 = vpop.f32.mrf.mxu0 }
 0x28e   : > { %v521_v40 = vadd.f32 %v520_v39, %v450_v38 }
 0x28f   : > { %v690_v41 = vpop.f32.mrf.mxu0 }
 0x290   : > { %524 = vst [vmem:[%s319_s13] sm:$0x1] %v521_v40 }
 0x291 PF: > { %p697_p5 = scmp.ge.s32.totalorder %s809_s12, 2  ;;  %s560_s14 = sand.u32 1, %s797_s10  }
 0x292   : > { %s561_s19 = scalar_lea.sflag [#allocation5], %s560_s14 }
 0x293   : > { %p694_p10 = pnand %p697_p5, %p907_p11 }
 0x295   : > { %p695_p6 = pneg %p694_p10 }
 0x297   : > { %792 = dma.done.wait (%p695_p6), %s561_s19, 256  }
 0x298   : > { %794 = vsyncadd (%p695_p6), %s561_s19, 4294967040  ;;  %p25_p7 = scmp.ge.s32.totalorder %s890_s15, 4   ;;  %s1022_s10 = smov %s801_s11 }
 0x299   : > { %s1023_s11 = smov %s805_s0  ;;  %s1024_s0 = smov %s901_s18 }
 0x29a   : > { %s1025_s12 = smov %s890_s15  ;;  %27 = sbr.rel (!%p25_p7) target bundleno = 18 (0x12), region = 94 }
 0x29f   :  { %572 = vsyncpa [#allocation5], 1 }
 0x2a0   :  { %574 = vsyncpa [#allocation5 + $0x1], 1 }

</bundles_post_ra>
